<compile_context>
chip_gen: v6e
topology: v6e:2x2x1
jax: 0.10.0
libtpu: 0.0.40
codegen_flags: <defaults>
</compile_context>

<pallas_src>
import functools

import numpy as np
import jax
import jax.numpy as jnp
from jax.experimental import pallas as pl
from jax.experimental.pallas import tpu as pltpu


STRIDES = (2, 1, 2, 1, 2, 1, 2, 1)
PAD = 1
NUM_LAYERS = len(STRIDES)
COUT = 6            # every layer outputs 6 channels
SUB_CONST = 4.3
TM_CAP = 8192       # max pixel-tile width (lanes), 128-aligned


# ----------------------------- Pallas kernel --------------------------------

def _affine_kernel(x_ref, w_ref, b_ref, o_ref):
    # x_ref: (Cin, TM)   gathered input pixels, lane-dense (pixels on lanes)
    # w_ref: (Cout, Cin) precomposed weight W_eff = W8 @ W7 @ ... @ W1
    # b_ref: (Cout, TM)  per-pixel precomposed bias (all layer biases, the border
    #                    constants and the final -4.3 already folded in)
    # o_ref: (Cout, TM)  final model output for this tile
    w = w_ref[...]
    acc = b_ref[...]
    # Tiny (3-wide) contraction -> unrolled VPU broadcast-FMA; do NOT feed the MXU.
    for c in range(x_ref.shape[0]):
        acc = acc + w[:, c:c + 1] * x_ref[c:c + 1, :]
    o_ref[...] = acc


def _fused_affine_pallas(xg, w_eff, bias_cols, tm):
    n, cin, hw_pad = xg.shape
    cout = w_eff.shape[0]
    num_tiles = hw_pad // tm
    return pl.pallas_call(
        _affine_kernel,
        out_shape=jax.ShapeDtypeStruct((n, cout, hw_pad), jnp.float32),
        grid=(num_tiles, n),                       # batch innermost: w/bias tiles reused
        in_specs=[
            pl.BlockSpec((None, cin, tm), lambda t, b: (b, 0, t)),
            pl.BlockSpec((cout, cin), lambda t, b: (0, 0)),
            pl.BlockSpec((cout, tm), lambda t, b: (0, t)),
        ],
        out_specs=pl.BlockSpec((None, cout, tm), lambda t, b: (b, 0, t)),
        compiler_params=pltpu.CompilerParams(
            dimension_semantics=("parallel", "parallel")),
    )(xg, w_eff, bias_cols)


# ------------------------- trace-time index plumbing -------------------------

def _axis_trace(length):
    """Lineage of each final output index along one axis through the pad/stride chain.

    Returns (out_len, src, depth). depth[i] == 0 -> output index i reads input index
    src[i]; depth[i] == k (1-based) -> the lineage hits layer k's zero padding, so the
    value after layer k is exactly b_k (before layers k+1..8 are applied)."""
    sizes = [length]
    for s in STRIDES:
        sizes.append((sizes[-1] + 2 * PAD - 1) // s + 1)   # torch Conv2d floor formula, k=1
    out_len = sizes[-1]
    src = np.zeros(out_len, np.int64)
    depth = np.zeros(out_len, np.int64)
    for i in range(out_len):
        pos, d = i, 0
        for k in range(NUM_LAYERS, 0, -1):                 # layer k reads a sizes[k-1] input
            pos = STRIDES[k - 1] * pos - PAD
            if pos < 0 or pos >= sizes[k - 1]:
                d = k
                break
        src[i] = pos if d == 0 else 0
        depth[i] = d
    return out_len, src, depth


def _precompose(params):
    """Suffix-compose the 8 affine layers.

    Returns:
      w_eff:        (6, 3)  = W8 @ ... @ W1
      consts_table: (6, 9)  col 0 = composed bias for real pixels (c_1 - 4.3),
                            col d = border constant for padding depth d (c_d - 4.3).
    """
    a_mat = jnp.eye(COUT, dtype=jnp.float32)       # A_{k+1}
    c_vec = jnp.zeros((COUT,), jnp.float32)        # c_{k+1}
    c_suffix = [None] * (NUM_LAYERS + 1)
    for k in range(NUM_LAYERS, 0, -1):
        wk, bk = params[k - 1]                     # wk: (Cout, Cin), bk: (Cout,)
        c_vec = a_mat @ bk.astype(jnp.float32) + c_vec     # c_k = A_{k+1} b_k + c_{k+1}
        a_mat = a_mat @ wk.astype(jnp.float32)             # A_k = A_{k+1} W_k
        c_suffix[k] = c_vec
    w_eff = a_mat                                                  # (6, 3)
    cols = [c_suffix[1]] + c_suffix[1:]                            # [real, d=1..8]
    consts_table = jnp.stack(cols, axis=1) - SUB_CONST             # (6, 9)
    return w_eff, consts_table


# ------------------------------ forward pass ---------------------------------

def model_forward(x_nchw, params):
    """Forward pass matching Model.forward (NCHW in, NCHW out)."""
    n, cin, h, w = x_nchw.shape
    h_out, src_h, dep_h = _axis_trace(h)
    w_out, src_w, dep_w = _axis_trace(w)
    hw_out = h_out * w_out

    depth2d = np.maximum(dep_h[:, None], dep_w[None, :]).reshape(-1)       # (hw_out,)
    src2d = (src_h[:, None] * w + src_w[None, :]).reshape(-1)              # (hw_out,)
    src2d = np.where(depth2d == 0, src2d, h * w)       # border pixels read the zero column

    # Lane-dense, 128-aligned pixel tiling.
    hw128 = ((hw_out + 127) // 128) * 128
    tm = min(hw128, TM_CAP)
    if n == 1 and hw128 >= 256:
        # keep >= 2 grid steps so v7x megacore can shard even with batch 1
        tm = min(tm, max(128, (hw128 // 2) // 128 * 128))
    hw_pad = ((hw_out + tm - 1) // tm) * tm

    src_idx = np.full(hw_pad, h * w, np.int64)     # pad columns read the zero column
    src_idx[:hw_out] = src2d
    bias_idx = np.zeros(hw_pad, np.int64)          # 0 -> real-pixel composed bias
    bias_idx[:hw_out] = depth2d                    # d -> border constant for depth d

    # Precomposed affine map + border constants (tiny, param-only math).
    w_eff, consts_table = _precompose(params)                               # (6,3), (6,9)
    bias_cols = jnp.take(consts_table, jnp.asarray(bias_idx, jnp.int32), axis=1)  # (6, hw_pad)

    # One gather of exactly the needed input pixels (plus an appended zero column
    # for border pixels), already in (n, cin, pixels) order -> no transposes.
    x_flat = x_nchw.reshape(n, cin, h * w).astype(jnp.float32)
    x_aug = jnp.concatenate([x_flat, jnp.zeros((n, cin, 1), jnp.float32)], axis=2)
    xg = jnp.take(x_aug, jnp.asarray(src_idx, jnp.int32), axis=2)           # (n, cin, hw_pad)

    y = _fused_affine_pallas(xg, w_eff, bias_cols, tm)                      # (n, 6, hw_pad)
    return y[:, :, :hw_out].reshape(n, COUT, h_out, w_out)


# --------------------------- params & reference -------------------------------

def init_params(key):
    """Deterministic init mirroring the PyTorch module: conv1 Conv2d(3,6,1), conv2..8
    Conv2d(6,6,1). Weights stored as (Cout, Cin)."""
    params = []
    cins = [3] + [6] * (NUM_LAYERS - 1)
    for i, cin in enumerate(cins):
        cout = COUT
        kw, kb = jax.random.split(jax.random.fold_in(key, i))
        scale = 1.0 / float(np.sqrt(cin))
        wgt = jax.random.uniform(kw, (cout, cin), jnp.float32, -scale, scale)
        bias = jax.random.uniform(kb, (cout,), jnp.float32, -scale, scale)
        params.append((wgt, bias))
    return params


def reference_forward(x_nchw, params):
    """Pure-JAX reference using lax.conv_general_dilated for validation."""
    x = x_nchw
    for (wgt, bias), s in zip(params, STRIDES):
        w4 = wgt[:, :, None, None]                       # OIHW
        x = jax.lax.conv_general_dilated(
            x, w4, window_strides=(s, s), padding=((PAD, PAD), (PAD, PAD)),
            dimension_numbers=("NCHW", "OIHW", "NCHW"))
        x = x + bias[None, :, None, None]
    return x - SUB_CONST


if __name__ == "__main__":
    key = jax.random.PRNGKey(0)
    k_x, k_p = jax.random.split(key)
    # Small shape consistent with the module (Cin must be 3); spec shape is (2, 3, 112, 112).
    x = jax.random.normal(k_x, (2, 3, 32, 32), jnp.float32)
    params = init_params(k_p)

    fwd = jax.jit(model_forward)
    out = jax.block_until_ready(fwd(x, params))

    ref = jax.block_until_ready(reference_forward(x, params))
    assert out.shape == ref.shape, (out.shape, ref.shape)
    assert jnp.allclose(out, ref, atol=1e-4, rtol=1e-4), "mismatch vs reference"

    print("KERNEL_OK")
</pallas_src>

<mosaic_0001>
module attributes {stable_mosaic.version = 11 : i64} {
  func.func @_affine_kernel(%arg0: i32, %arg1: i32, %arg2: memref<1x3x128xf32, #tpu.memory_space<vmem>>, %arg3: memref<6x3xf32, #tpu.memory_space<vmem>>, %arg4: memref<6x128xf32, #tpu.memory_space<vmem>>, %arg5: memref<1x6x128xf32, #tpu.memory_space<vmem>>) attributes {dimension_semantics = [#tpu.dimension_semantics<parallel>, #tpu.dimension_semantics<parallel>], iteration_bounds = array<i64: 1, 2>, scalar_prefetch = 0 : i64, scratch_operands = 0 : i64, tpu.core_type = #tpu.core_type<tc>, window_params = [{transform_indices = @transform_0, window_bounds = array<i64: 1, 3, 128>}, {pipeline_mode = #tpu.pipeline_mode<synchronous>, transform_indices = @transform_1, window_bounds = array<i64: 6, 3>}, {transform_indices = @transform_2, window_bounds = array<i64: 6, 128>}, {transform_indices = @transform_3, window_bounds = array<i64: 1, 6, 128>}]} {
    %c0 = arith.constant 0 : index
    %c0_0 = arith.constant 0 : index
    %0 = vector.load %arg3[%c0, %c0_0] : memref<6x3xf32, #tpu.memory_space<vmem>>, vector<6x3xf32>
    %c0_1 = arith.constant 0 : index
    %c0_2 = arith.constant 0 : index
    %1 = vector.load %arg4[%c0_1, %c0_2] : memref<6x128xf32, #tpu.memory_space<vmem>>, vector<6x128xf32>
    %2 = vector.extract_strided_slice %0 {offsets = [0, 0], sizes = [6, 1], strides = [1, 1]} : vector<6x3xf32> to vector<6x1xf32>
    %c0_3 = arith.constant 0 : index
    %c0_4 = arith.constant 0 : index
    %c0_5 = arith.constant 0 : index
    %3 = vector.load %arg2[%c0_3, %c0_4, %c0_5] : memref<1x3x128xf32, #tpu.memory_space<vmem>>, vector<1x1x128xf32>
    %4 = vector.shape_cast %3 : vector<1x1x128xf32> to vector<1x128xf32>
    %5 = vector.broadcast %2 : vector<6x1xf32> to vector<6x128xf32>
    %6 = vector.broadcast %4 : vector<1x128xf32> to vector<6x128xf32>
    %7 = arith.mulf %5, %6 : vector<6x128xf32>
    %8 = arith.addf %1, %7 : vector<6x128xf32>
    %9 = vector.extract_strided_slice %0 {offsets = [0, 1], sizes = [6, 1], strides = [1, 1]} : vector<6x3xf32> to vector<6x1xf32>
    %c0_6 = arith.constant 0 : index
    %c1 = arith.constant 1 : index
    %c0_7 = arith.constant 0 : index
    %10 = vector.load %arg2[%c0_6, %c1, %c0_7] : memref<1x3x128xf32, #tpu.memory_space<vmem>>, vector<1x1x128xf32>
    %11 = vector.shape_cast %10 : vector<1x1x128xf32> to vector<1x128xf32>
    %12 = vector.broadcast %9 : vector<6x1xf32> to vector<6x128xf32>
    %13 = vector.broadcast %11 : vector<1x128xf32> to vector<6x128xf32>
    %14 = arith.mulf %12, %13 : vector<6x128xf32>
    %15 = arith.addf %8, %14 : vector<6x128xf32>
    %16 = vector.extract_strided_slice %0 {offsets = [0, 2], sizes = [6, 1], strides = [1, 1]} : vector<6x3xf32> to vector<6x1xf32>
    %c0_8 = arith.constant 0 : index
    %c2 = arith.constant 2 : index
    %c0_9 = arith.constant 0 : index
    %17 = vector.load %arg2[%c0_8, %c2, %c0_9] : memref<1x3x128xf32, #tpu.memory_space<vmem>>, vector<1x1x128xf32>
    %18 = vector.shape_cast %17 : vector<1x1x128xf32> to vector<1x128xf32>
    %19 = vector.broadcast %16 : vector<6x1xf32> to vector<6x128xf32>
    %20 = vector.broadcast %18 : vector<1x128xf32> to vector<6x128xf32>
    %21 = arith.mulf %19, %20 : vector<6x128xf32>
    %22 = arith.addf %15, %21 : vector<6x128xf32>
    %c0_10 = arith.constant 0 : index
    %c0_11 = arith.constant 0 : index
    %c0_12 = arith.constant 0 : index
    %23 = vector.load %arg5[%c0_10, %c0_11, %c0_12] : memref<1x6x128xf32, #tpu.memory_space<vmem>>, vector<1x6x128xf32>
    %24 = vector.shape_cast %23 : vector<1x6x128xf32> to vector<6x128xf32>
    %25 = vector.shape_cast %22 : vector<6x128xf32> to vector<1x6x128xf32>
    tpu.vector_store %arg5[%c0_10, %c0_11, %c0_12], %25 {strides = array<i32>} : memref<1x6x128xf32, #tpu.memory_space<vmem>>, vector<1x6x128xf32>,
    return
  }
  func.func @transform_0(%arg0: i32, %arg1: i32) -> (i32, i32, i32) {
    %c0_i32 = arith.constant 0 : i32
    %c0_i32_0 = arith.constant 0 : i32
    return %arg1, %c0_i32, %arg0 : i32, i32, i32
  }
  func.func @transform_1(%arg0: i32, %arg1: i32) -> (i32, i32) {
    %c0_i32 = arith.constant 0 : i32
    %c0_i32_0 = arith.constant 0 : i32
    %c0_i32_1 = arith.constant 0 : i32
    return %c0_i32, %c0_i32_0 : i32, i32
  }
  func.func @transform_2(%arg0: i32, %arg1: i32) -> (i32, i32) {
    %c0_i32 = arith.constant 0 : i32
    %c0_i32_0 = arith.constant 0 : i32
    return %c0_i32, %arg0 : i32, i32
  }
  func.func @transform_3(%arg0: i32, %arg1: i32) -> (i32, i32, i32) {
    %c0_i32 = arith.constant 0 : i32
    %c0_i32_0 = arith.constant 0 : i32
    return %arg1, %c0_i32, %arg0 : i32, i32, i32
  }
}

</mosaic_0001>

<bundles_post_ra>
// kernel: model_forward.1
= control target key start
LH: loop header
LB: loop body
LE: loop exit
PB: predicated region body
PF: predicated region fallthrough
CT: control target
= control target key end

     0   :  { %s432_s12 = smov 0   ;;  %s434_s13 = smov 0   ;;  %s471_s0 = inlined_call_operand.vmem [shape: f32[2,3,128], index: 0, kind: input, shape index: {}]   ;;  %s472_s1 = inlined_call_operand.vmem [shape: f32[6,3], index: 1, kind: input, shape index: {}]   ;;  %s473_s2 = inlined_call_operand.vmem [shape: f32[6,128], index: 2, kind: input, shape index: {}]   ;;  %s474_s3 = inlined_call_operand.vmem [shape: f32[2,6,128], index: 3, kind: output, shape index: {}]  }
   0x1   :  { %s436_s14 = smov 0  }
   0x2 LB: > { %s22_s15 = sadd.s32 1, %s403_s13  ;;  %p346_p0 = scmp.ge.s32.totalorder %s407_s14, 1  ;;  %s407_s14 = sphi %s436_s14, %s13_s14   ;;  %s403_s13 = sphi %s434_s13, %s476_s13   ;;  %s399_s12 = sphi %s432_s12, %s475_s12  }
   0x3   : > { %p23_p1 = scmp.ge.s32.totalorder %s22_s15, 2  ;;  %p164_p2 = scmp.lt.s32.totalorder %s407_s14, 3 }
   0x5   : > { %s478_s15 = smov (%p23_p1, %s22_s15), 0  ;;  %p165_p3 = pnand %p346_p0, %p164_p2 }
   0x6   : > { %p196_p4 = scmp.lt.s32.totalorder (!%p165_p3), %s399_s12, 1 }
   0x7   : > { %168 = sbr.rel (%p165_p3) target bundleno = 150 (0x96), region = 32 }
   0xc   : > { %v214_v0 = vld [vmem:[%s472_s1] sm:$0x3f]  ;;  %v409_v1 = vmov 0   ;;  %v410_v2 = vmov 2   ;;  %v411_v3 = vmov 1   ;;  %s480_s12 = smov (!%p196_p4, %s399_s12), 1 }
   0xd   : > { %381 = vset.pattern.permute.xlu0 %v409_v1  ;;  %383 = vset.pattern.permute.xlu1 %v410_v2  ;;  %s347_s18 = sshll.u32 %s480_s12, 2  ;;  %v215_v7 = vld [vmem:[%s473_s2] sm:$0x3f]  ;;  %s348_s24 = sshll.u32 %s480_s12, 3 }
   0xe   : > { %219 = vperm.xlu0 %381, %v214_v0   ;;  %241 = vperm.xlu1 %383, %v214_v0   ;;  %s202_s21 = scalar_lea.vmem %s471_s0, %s347_s18  ;;  %s213_s27 = scalar_lea.vmem %s474_s3, %s348_s24 }
   0xf   : > { %v349_v4 = vld [vmem:[%s202_s21] ss:$0 sm:$0xff]  ;;  %v350_v8 = vld [vmem:[%s202_s21 + $0x1] ss:$0 sm:$0xff]  ;;  %v351_v10 = vld [vmem:[%s202_s21 + $0x2] ss:$0 sm:$0xff] }
  0x12   : > { %382 = vset.pattern.permute.xlu0 %v411_v3 }
  0x13   : > { %230 = vperm.xlu0 %382, %v214_v0  }
  0x17   : > { %384 = vset.pattern.permute.xlu0 %v410_v2 }
  0x89   : > { %v220_v5 = vpop.permute.xlu0 %219  ;;  %v242_v9 = vpop.permute.xlu1 %241 }
  0x8a   : > { %v226_v6 = vmul.f32 %v349_v4, %v220_v5  ;;  %v248_v14 = vmul.f32 %v351_v10, %v242_v9 }
  0x8c   : > { %v227_v12 = vadd.f32 %v226_v6, %v215_v7 }
  0x8e   : > { %v231_v11 = vpop.permute.xlu0 %230 }
  0x8f   : > { %v237_v13 = vmul.f32 %v350_v8, %v231_v11 }
  0x91   : > { %v238_v15 = vadd.f32 %v237_v13, %v227_v12 }
  0x93   : > { %v249_v16 = vadd.f32 %v248_v14, %v238_v15 }
  0x95   : > { %250 = vst [vmem:[%s213_s27] sm:$0x3f] %v249_v16 }
  0x96 PF: > { %s13_s14 = sadd.s32 1, %s407_s14   ;;  %s475_s12 = smov %s403_s13 }
  0x97   : > { %p10_p5 = scmp.ge.s32.totalorder %s13_s14, 4   ;;  %s476_s13 = smov %s478_s15 }
  0x99   :  { %12 = sbr.rel (!%p10_p5) target bundleno = 2 (0x2), region = 65 }

</bundles_post_ra>
